<compile_context>
chip_gen: v6e
topology: v6e:2x2x1
jax: 0.10.0
libtpu: 0.0.40
codegen_flags: <defaults>
</compile_context>

<pallas_src>
import functools

import jax
import jax.numpy as jnp
import numpy as np
from jax import lax
from jax.experimental import pallas as pl
from jax.experimental.pallas import tpu as pltpu

K_SIZE = 4
STRIDE = 2
PAD = 1


def _phase_slabs(x):
    """x: (B, C, H, W) -> slabs (B, 2, 4, C, (OH+1)*OW), plus OH, OW.

    slabs[b, ph, kw, c, i*OW + j] = xpad[b, c, 2*i + ph, 2*j + kw], so the
    conv tap (kh, kw) for output pixel (oh, ow) reads
    slabs[b, kh % 2, kw, c, (oh + kh//2)*OW + ow]  -- a contiguous lane slice.
    """
    B, C, H, W = x.shape
    assert H % 2 == 0 and W % 2 == 0, "k=4,s=2,p=1 path assumes even H, W"
    OH = (H + 2 * PAD - K_SIZE) // STRIDE + 1
    OW = (W + 2 * PAD - K_SIZE) // STRIDE + 1
    xp = jnp.pad(x, ((0, 0), (0, 0), (PAD, PAD), (PAD, PAD)))
    per_ph = []
    for ph in range(2):
        per_kw = []
        for kw in range(K_SIZE):
            s = xp[:, :, ph::STRIDE, kw:kw + STRIDE * OW:STRIDE]  # (B,C,OH+1,OW)
            per_kw.append(s.reshape(B, C, (OH + 1) * OW))
        per_ph.append(jnp.stack(per_kw, axis=1))                  # (B,4,C,P)
    return jnp.stack(per_ph, axis=1), OH, OW                      # (B,2,4,C,P)


def _block_kernel(fvar_ref, ivar_ref, w_ref, b_ref, concat_ref, pool_ref, *, OH, OW):
    # fvar_ref: (2, 4*Cin, P)   P = (OH+1)*OW, pixels on lanes
    # ivar_ref: (2, 4, Cimg, P)
    # w_ref:    (4, Cout, 4*Cin), b_ref: (Cout, 1)
    # concat_ref: (Cout+Cimg, OH*OW), pool_ref: (Cimg, OH*OW)
    pout = OH * OW
    cout = w_ref.shape[1]
    cimg = ivar_ref.shape[2]

    # Conv: 4 row-tap matmuls on the MXU, f32 accumulation.
    acc = jnp.zeros((cout, pout), jnp.float32)
    for kh in range(K_SIZE):
        ph, lo = kh % 2, (kh // 2) * OW
        x_tap = fvar_ref[ph, :, lo:lo + pout]                   # (4*Cin, OH*OW)
        acc = acc + jnp.dot(w_ref[kh], x_tap,
                            preferred_element_type=jnp.float32)
    conv = jnp.maximum(acc + b_ref[...], 0.0)

    # AvgPool (count_include_pad=True): sum of the same slabs, * 1/16.
    ssum = []
    for ph in range(2):
        s = ivar_ref[ph, 0]
        for kw in range(1, K_SIZE):
            s = s + ivar_ref[ph, kw]
        ssum.append(s)                                          # (Cimg, P)
    pool = jnp.zeros((cimg, pout), jnp.float32)
    for kh in range(K_SIZE):
        ph, lo = kh % 2, (kh // 2) * OW
        pool = pool + ssum[ph][:, lo:lo + pout]
    pool = pool * (1.0 / (K_SIZE * K_SIZE))

    # Channel-concat happens here: outputs leave the kernel in final layout.
    concat_ref[0:cout, :] = conv.astype(concat_ref.dtype)
    concat_ref[cout:cout + cimg, :] = pool.astype(concat_ref.dtype)
    pool_ref[...] = pool.astype(pool_ref.dtype)


@jax.jit
def block_forward(features, images, weight, bias):
    """features: (B, Cin, H, W), images: (B, Cimg, H, W) in NCHW.
    weight: (Cout, Cin, 4, 4), bias: (Cout,).
    Returns (concat_features, pooled_images), same semantics as the nn.Module."""
    B, Cin, H, W = features.shape
    _, Cimg, Hi, Wi = images.shape
    Cout = weight.shape[0]

    fvar, OH, OW = _phase_slabs(features)         # (B, 2, 4, Cin, P)
    ivar, OHi, OWi = _phase_slabs(images)         # (B, 2, 4, Cimg, P)
    assert (OH, OW) == (OHi, OWi)
    P = (OH + 1) * OW
    Pout = OH * OW

    fvar = fvar.reshape(B, 2, K_SIZE * Cin, P)    # merge (kw, ci) for the matmul K dim
    # Weight laid out so w_big[kh, co, kw*Cin+ci] = weight[co, ci, kh, kw]
    w_big = jnp.transpose(weight, (2, 0, 3, 1)).reshape(K_SIZE, Cout, K_SIZE * Cin)
    b2d = bias.reshape(Cout, 1)

    kernel = functools.partial(_block_kernel, OH=OH, OW=OW)

    # TODO(synk): for very large spatial extents, additionally tile the pixel
    # dimension (needs overlapping input windows -> manual DMA / Element blocks).
    concat_flat, pool_flat = pl.pallas_call(
        kernel,
        out_shape=(jax.ShapeDtypeStruct((B, Cout + Cimg, Pout), jnp.float32),
                   jax.ShapeDtypeStruct((B, Cimg, Pout), jnp.float32)),
        grid=(B,),
        in_specs=[
            pl.BlockSpec((None, 2, K_SIZE * Cin, P), lambda b: (b, 0, 0, 0)),
            pl.BlockSpec((None, 2, K_SIZE, Cimg, P), lambda b: (b, 0, 0, 0, 0)),
            pl.BlockSpec((K_SIZE, Cout, K_SIZE * Cin), lambda b: (0, 0, 0)),
            pl.BlockSpec((Cout, 1), lambda b: (0, 0)),
        ],
        out_specs=(
            pl.BlockSpec((None, Cout + Cimg, Pout), lambda b: (b, 0, 0)),
            pl.BlockSpec((None, Cimg, Pout), lambda b: (b, 0, 0)),
        ),
        compiler_params=pltpu.CompilerParams(
            dimension_semantics=("parallel",),
            vmem_limit_bytes=32 * 1024 * 1024,
        ),
    )(fvar, ivar, w_big, b2d)

    # Only free reshapes left: N,C,(H*W) -> N,C,H,W.
    concat = concat_flat.reshape(B, Cout + Cimg, OH, OW)
    pooled = pool_flat.reshape(B, Cimg, OH, OW)
    return concat, pooled


def _reference(features, images, weight, bias):
    """Pure-JAX reference (same semantics as the PyTorch Block)."""
    conv = lax.conv_general_dilated(
        features, weight, window_strides=(STRIDE, STRIDE),
        padding=((PAD, PAD), (PAD, PAD)),
        dimension_numbers=("NCHW", "OIHW", "NCHW"))
    conv = jnp.maximum(conv + bias[None, :, None, None], 0.0)
    imgs_p = jnp.pad(images, ((0, 0), (0, 0), (PAD, PAD), (PAD, PAD)))
    pooled = lax.reduce_window(
        imgs_p, 0.0, lax.add,
        window_dimensions=(1, 1, K_SIZE, K_SIZE),
        window_strides=(1, 1, STRIDE, STRIDE),
        padding="VALID") / (K_SIZE * K_SIZE)
    return jnp.concatenate([conv, pooled], axis=1), pooled


if __name__ == "__main__":
    key = jax.random.PRNGKey(0)
    k1, k2, k3, k4 = jax.random.split(key, 4)

    B, Cin, Cimg, Cout, H, W = 2, 4, 3, 8, 16, 16
    features = jax.random.normal(k1, (B, Cin, H, W), jnp.float32)
    images = jax.random.normal(k2, (B, Cimg, H, W), jnp.float32)

    # Deterministic synthetic params (shapes match nn.Conv2d(Cin, Cout, 4, 2, 1)).
    fan_in = Cin * K_SIZE * K_SIZE
    weight = jax.random.normal(k3, (Cout, Cin, K_SIZE, K_SIZE), jnp.float32) / np.sqrt(fan_in)
    bias = jax.random.normal(k4, (Cout,), jnp.float32) * 0.01

    out_feats, out_imgs = jax.block_until_ready(
        block_forward(features, images, weight, bias))

    ref_feats, ref_imgs = _reference(features, images, weight, bias)
    assert out_feats.shape == (B, Cout + Cimg, H // 2, W // 2)
    assert out_imgs.shape == (B, Cimg, H // 2, W // 2)
    np.testing.assert_allclose(np.asarray(out_feats), np.asarray(ref_feats),
                               rtol=1e-5, atol=1e-5)
    np.testing.assert_allclose(np.asarray(out_imgs), np.asarray(ref_imgs),
                               rtol=1e-5, atol=1e-5)
    print("KERNEL_OK")
</pallas_src>

<mosaic_0001>
module attributes {stable_mosaic.version = 11 : i64} {
  func.func @_block_kernel(%arg0: i32, %arg1: memref<1x2x16x72xf32, #tpu.memory_space<vmem>>, %arg2: memref<1x2x4x3x72xf32, #tpu.memory_space<vmem>>, %arg3: memref<4x8x16xf32, #tpu.memory_space<vmem>>, %arg4: memref<8x1xf32, #tpu.memory_space<vmem>>, %arg5: memref<1x11x64xf32, #tpu.memory_space<vmem>>, %arg6: memref<1x3x64xf32, #tpu.memory_space<vmem>>) attributes {dimension_semantics = [#tpu.dimension_semantics<parallel>], iteration_bounds = array<i64: 2>, scalar_prefetch = 0 : i64, scratch_operands = 0 : i64, tpu.core_type = #tpu.core_type<tc>, window_params = [{transform_indices = @transform_0, window_bounds = array<i64: 1, 2, 16, 72>}, {transform_indices = @transform_1, window_bounds = array<i64: 1, 2, 4, 3, 72>}, {pipeline_mode = #tpu.pipeline_mode<synchronous>, transform_indices = @transform_2, window_bounds = array<i64: 4, 8, 16>}, {pipeline_mode = #tpu.pipeline_mode<synchronous>, transform_indices = @transform_3, window_bounds = array<i64: 8, 1>}, {transform_indices = @transform_4, window_bounds = array<i64: 1, 11, 64>}, {transform_indices = @transform_5, window_bounds = array<i64: 1, 3, 64>}]} {
    %cst = arith.constant 0.000000e+00 : f32
    %0 = vector.broadcast %cst : f32 to vector<8x64xf32>
    %c0 = arith.constant 0 : index
    %c0_0 = arith.constant 0 : index
    %c0_1 = arith.constant 0 : index
    %c0_2 = arith.constant 0 : index
    %1 = vector.load %arg1[%c0, %c0_0, %c0_1, %c0_2] : memref<1x2x16x72xf32, #tpu.memory_space<vmem>>, vector<1x1x16x64xf32>
    %2 = vector.shape_cast %1 : vector<1x1x16x64xf32> to vector<16x64xf32>
    %c0_3 = arith.constant 0 : index
    %c0_4 = arith.constant 0 : index
    %c0_5 = arith.constant 0 : index
    %3 = vector.load %arg3[%c0_3, %c0_4, %c0_5] : memref<4x8x16xf32, #tpu.memory_space<vmem>>, vector<1x8x16xf32>
    %4 = vector.shape_cast %3 : vector<1x8x16xf32> to vector<8x16xf32>
    %cst_6 = arith.constant dense<0.000000e+00> : vector<8x64xf32>
    %5 = tpu.matmul %4, %2, %cst_6 {dimension_numbers = #tpu.dot_dimension_numbers<[1], [0], [0], [1], [0, 0, 1, 1], [], []>} : vector<8x16xf32>, vector<16x64xf32>, vector<8x64xf32> -> vector<8x64xf32>
    %6 = arith.addf %0, %5 : vector<8x64xf32>
    %c0_7 = arith.constant 0 : index
    %c1 = arith.constant 1 : index
    %c0_8 = arith.constant 0 : index
    %c0_9 = arith.constant 0 : index
    %7 = vector.load %arg1[%c0_7, %c1, %c0_8, %c0_9] : memref<1x2x16x72xf32, #tpu.memory_space<vmem>>, vector<1x1x16x64xf32>
    %8 = vector.shape_cast %7 : vector<1x1x16x64xf32> to vector<16x64xf32>
    %c1_10 = arith.constant 1 : index
    %c0_11 = arith.constant 0 : index
    %c0_12 = arith.constant 0 : index
    %9 = vector.load %arg3[%c1_10, %c0_11, %c0_12] : memref<4x8x16xf32, #tpu.memory_space<vmem>>, vector<1x8x16xf32>
    %10 = vector.shape_cast %9 : vector<1x8x16xf32> to vector<8x16xf32>
    %cst_13 = arith.constant dense<0.000000e+00> : vector<8x64xf32>
    %11 = tpu.matmul %10, %8, %cst_13 {dimension_numbers = #tpu.dot_dimension_numbers<[1], [0], [0], [1], [0, 0, 1, 1], [], []>} : vector<8x16xf32>, vector<16x64xf32>, vector<8x64xf32> -> vector<8x64xf32>
    %12 = arith.addf %6, %11 : vector<8x64xf32>
    %c0_14 = arith.constant 0 : index
    %c0_15 = arith.constant 0 : index
    %c0_16 = arith.constant 0 : index
    %c8 = arith.constant 8 : index
    %13 = vector.load %arg1[%c0_14, %c0_15, %c0_16, %c8] : memref<1x2x16x72xf32, #tpu.memory_space<vmem>>, vector<1x1x16x64xf32>
    %14 = vector.shape_cast %13 : vector<1x1x16x64xf32> to vector<16x64xf32>
    %c2 = arith.constant 2 : index
    %c0_17 = arith.constant 0 : index
    %c0_18 = arith.constant 0 : index
    %15 = vector.load %arg3[%c2, %c0_17, %c0_18] : memref<4x8x16xf32, #tpu.memory_space<vmem>>, vector<1x8x16xf32>
    %16 = vector.shape_cast %15 : vector<1x8x16xf32> to vector<8x16xf32>
    %cst_19 = arith.constant dense<0.000000e+00> : vector<8x64xf32>
    %17 = tpu.matmul %16, %14, %cst_19 {dimension_numbers = #tpu.dot_dimension_numbers<[1], [0], [0], [1], [0, 0, 1, 1], [], []>} : vector<8x16xf32>, vector<16x64xf32>, vector<8x64xf32> -> vector<8x64xf32>
    %18 = arith.addf %12, %17 : vector<8x64xf32>
    %c0_20 = arith.constant 0 : index
    %c1_21 = arith.constant 1 : index
    %c0_22 = arith.constant 0 : index
    %c8_23 = arith.constant 8 : index
    %19 = vector.load %arg1[%c0_20, %c1_21, %c0_22, %c8_23] : memref<1x2x16x72xf32, #tpu.memory_space<vmem>>, vector<1x1x16x64xf32>
    %20 = vector.shape_cast %19 : vector<1x1x16x64xf32> to vector<16x64xf32>
    %c3 = arith.constant 3 : index
    %c0_24 = arith.constant 0 : index
    %c0_25 = arith.constant 0 : index
    %21 = vector.load %arg3[%c3, %c0_24, %c0_25] : memref<4x8x16xf32, #tpu.memory_space<vmem>>, vector<1x8x16xf32>
    %22 = vector.shape_cast %21 : vector<1x8x16xf32> to vector<8x16xf32>
    %cst_26 = arith.constant dense<0.000000e+00> : vector<8x64xf32>
    %23 = tpu.matmul %22, %20, %cst_26 {dimension_numbers = #tpu.dot_dimension_numbers<[1], [0], [0], [1], [0, 0, 1, 1], [], []>} : vector<8x16xf32>, vector<16x64xf32>, vector<8x64xf32> -> vector<8x64xf32>
    %24 = arith.addf %18, %23 : vector<8x64xf32>
    %c0_27 = arith.constant 0 : index
    %c0_28 = arith.constant 0 : index
    %25 = vector.load %arg4[%c0_27, %c0_28] : memref<8x1xf32, #tpu.memory_space<vmem>>, vector<8x1xf32>
    %26 = vector.broadcast %25 : vector<8x1xf32> to vector<8x64xf32>
    %27 = arith.addf %24, %26 : vector<8x64xf32>
    %cst_29 = arith.constant 0.000000e+00 : f32
    %28 = vector.broadcast %cst_29 : f32 to vector<8x64xf32>
    %29 = arith.maximumf %27, %28 : vector<8x64xf32>
    %c0_30 = arith.constant 0 : index
    %c0_31 = arith.constant 0 : index
    %c0_32 = arith.constant 0 : index
    %c0_33 = arith.constant 0 : index
    %c0_34 = arith.constant 0 : index
    %30 = vector.load %arg2[%c0_30, %c0_31, %c0_32, %c0_33, %c0_34] : memref<1x2x4x3x72xf32, #tpu.memory_space<vmem>>, vector<1x1x1x3x72xf32>
    %31 = vector.shape_cast %30 : vector<1x1x1x3x72xf32> to vector<3x72xf32>
    %c0_35 = arith.constant 0 : index
    %c0_36 = arith.constant 0 : index
    %c1_37 = arith.constant 1 : index
    %c0_38 = arith.constant 0 : index
    %c0_39 = arith.constant 0 : index
    %32 = vector.load %arg2[%c0_35, %c0_36, %c1_37, %c0_38, %c0_39] : memref<1x2x4x3x72xf32, #tpu.memory_space<vmem>>, vector<1x1x1x3x72xf32>
    %33 = vector.shape_cast %32 : vector<1x1x1x3x72xf32> to vector<3x72xf32>
    %34 = arith.addf %31, %33 : vector<3x72xf32>
    %c0_40 = arith.constant 0 : index
    %c0_41 = arith.constant 0 : index
    %c2_42 = arith.constant 2 : index
    %c0_43 = arith.constant 0 : index
    %c0_44 = arith.constant 0 : index
    %35 = vector.load %arg2[%c0_40, %c0_41, %c2_42, %c0_43, %c0_44] : memref<1x2x4x3x72xf32, #tpu.memory_space<vmem>>, vector<1x1x1x3x72xf32>
    %36 = vector.shape_cast %35 : vector<1x1x1x3x72xf32> to vector<3x72xf32>
    %37 = arith.addf %34, %36 : vector<3x72xf32>
    %c0_45 = arith.constant 0 : index
    %c0_46 = arith.constant 0 : index
    %c3_47 = arith.constant 3 : index
    %c0_48 = arith.constant 0 : index
    %c0_49 = arith.constant 0 : index
    %38 = vector.load %arg2[%c0_45, %c0_46, %c3_47, %c0_48, %c0_49] : memref<1x2x4x3x72xf32, #tpu.memory_space<vmem>>, vector<1x1x1x3x72xf32>
    %39 = vector.shape_cast %38 : vector<1x1x1x3x72xf32> to vector<3x72xf32>
    %40 = arith.addf %37, %39 : vector<3x72xf32>
    %c0_50 = arith.constant 0 : index
    %c1_51 = arith.constant 1 : index
    %c0_52 = arith.constant 0 : index
    %c0_53 = arith.constant 0 : index
    %c0_54 = arith.constant 0 : index
    %41 = vector.load %arg2[%c0_50, %c1_51, %c0_52, %c0_53, %c0_54] : memref<1x2x4x3x72xf32, #tpu.memory_space<vmem>>, vector<1x1x1x3x72xf32>
    %42 = vector.shape_cast %41 : vector<1x1x1x3x72xf32> to vector<3x72xf32>
    %c0_55 = arith.constant 0 : index
    %c1_56 = arith.constant 1 : index
    %c1_57 = arith.constant 1 : index
    %c0_58 = arith.constant 0 : index
    %c0_59 = arith.constant 0 : index
    %43 = vector.load %arg2[%c0_55, %c1_56, %c1_57, %c0_58, %c0_59] : memref<1x2x4x3x72xf32, #tpu.memory_space<vmem>>, vector<1x1x1x3x72xf32>
    %44 = vector.shape_cast %43 : vector<1x1x1x3x72xf32> to vector<3x72xf32>
    %45 = arith.addf %42, %44 : vector<3x72xf32>
    %c0_60 = arith.constant 0 : index
    %c1_61 = arith.constant 1 : index
    %c2_62 = arith.constant 2 : index
    %c0_63 = arith.constant 0 : index
    %c0_64 = arith.constant 0 : index
    %46 = vector.load %arg2[%c0_60, %c1_61, %c2_62, %c0_63, %c0_64] : memref<1x2x4x3x72xf32, #tpu.memory_space<vmem>>, vector<1x1x1x3x72xf32>
    %47 = vector.shape_cast %46 : vector<1x1x1x3x72xf32> to vector<3x72xf32>
    %48 = arith.addf %45, %47 : vector<3x72xf32>
    %c0_65 = arith.constant 0 : index
    %c1_66 = arith.constant 1 : index
    %c3_67 = arith.constant 3 : index
    %c0_68 = arith.constant 0 : index
    %c0_69 = arith.constant 0 : index
    %49 = vector.load %arg2[%c0_65, %c1_66, %c3_67, %c0_68, %c0_69] : memref<1x2x4x3x72xf32, #tpu.memory_space<vmem>>, vector<1x1x1x3x72xf32>
    %50 = vector.shape_cast %49 : vector<1x1x1x3x72xf32> to vector<3x72xf32>
    %51 = arith.addf %48, %50 : vector<3x72xf32>
    %cst_70 = arith.constant 0.000000e+00 : f32
    %52 = vector.broadcast %cst_70 : f32 to vector<3x64xf32>
    %53 = vector.extract_strided_slice %40 {offsets = [0, 0], sizes = [3, 64], strides = [1, 1]} : vector<3x72xf32> to vector<3x64xf32>
    %54 = arith.addf %52, %53 : vector<3x64xf32>
    %55 = vector.extract_strided_slice %51 {offsets = [0, 0], sizes = [3, 64], strides = [1, 1]} : vector<3x72xf32> to vector<3x64xf32>
    %56 = arith.addf %54, %55 : vector<3x64xf32>
    %57 = vector.extract_strided_slice %40 {offsets = [0, 8], sizes = [3, 64], strides = [1, 1]} : vector<3x72xf32> to vector<3x64xf32>
    %58 = arith.addf %56, %57 : vector<3x64xf32>
    %59 = vector.extract_strided_slice %51 {offsets = [0, 8], sizes = [3, 64], strides = [1, 1]} : vector<3x72xf32> to vector<3x64xf32>
    %60 = arith.addf %58, %59 : vector<3x64xf32>
    %cst_71 = arith.constant 6.250000e-02 : f32
    %61 = vector.broadcast %cst_71 : f32 to vector<3x64xf32>
    %62 = arith.mulf %60, %61 : vector<3x64xf32>
    %c0_72 = arith.constant 0 : index
    %c0_73 = arith.constant 0 : index
    %c0_74 = arith.constant 0 : index
    %63 = vector.load %arg5[%c0_72, %c0_73, %c0_74] : memref<1x11x64xf32, #tpu.memory_space<vmem>>, vector<1x8x64xf32>
    %64 = vector.shape_cast %63 : vector<1x8x64xf32> to vector<8x64xf32>
    %65 = vector.shape_cast %29 : vector<8x64xf32> to vector<1x8x64xf32>
    tpu.vector_store %arg5[%c0_72, %c0_73, %c0_74], %65 {strides = array<i32>} : memref<1x11x64xf32, #tpu.memory_space<vmem>>, vector<1x8x64xf32>,
    %c0_75 = arith.constant 0 : index
    %c8_76 = arith.constant 8 : index
    %c0_77 = arith.constant 0 : index
    %66 = vector.load %arg5[%c0_75, %c8_76, %c0_77] : memref<1x11x64xf32, #tpu.memory_space<vmem>>, vector<1x3x64xf32>
    %67 = vector.shape_cast %66 : vector<1x3x64xf32> to vector<3x64xf32>
    %68 = vector.shape_cast %62 : vector<3x64xf32> to vector<1x3x64xf32>
    tpu.vector_store %arg5[%c0_75, %c8_76, %c0_77], %68 {strides = array<i32>} : memref<1x11x64xf32, #tpu.memory_space<vmem>>, vector<1x3x64xf32>,
    %c0_78 = arith.constant 0 : index
    %c0_79 = arith.constant 0 : index
    %c0_80 = arith.constant 0 : index
    %69 = vector.load %arg6[%c0_78, %c0_79, %c0_80] : memref<1x3x64xf32, #tpu.memory_space<vmem>>, vector<1x3x64xf32>
    %70 = vector.shape_cast %69 : vector<1x3x64xf32> to vector<3x64xf32>
    %71 = vector.shape_cast %62 : vector<3x64xf32> to vector<1x3x64xf32>
    tpu.vector_store %arg6[%c0_78, %c0_79, %c0_80], %71 {strides = array<i32>} : memref<1x3x64xf32, #tpu.memory_space<vmem>>, vector<1x3x64xf32>,
    return
  }
  func.func @transform_0(%arg0: i32) -> (i32, i32, i32, i32) {
    %c0_i32 = arith.constant 0 : i32
    %c0_i32_0 = arith.constant 0 : i32
    %c0_i32_1 = arith.constant 0 : i32
    %c0_i32_2 = arith.constant 0 : i32
    return %arg0, %c0_i32, %c0_i32_0, %c0_i32_1 : i32, i32, i32, i32
  }
  func.func @transform_1(%arg0: i32) -> (i32, i32, i32, i32, i32) {
    %c0_i32 = arith.constant 0 : i32
    %c0_i32_0 = arith.constant 0 : i32
    %c0_i32_1 = arith.constant 0 : i32
    %c0_i32_2 = arith.constant 0 : i32
    %c0_i32_3 = arith.constant 0 : i32
    return %arg0, %c0_i32, %c0_i32_0, %c0_i32_1, %c0_i32_2 : i32, i32, i32, i32, i32
  }
  func.func @transform_2(%arg0: i32) -> (i32, i32, i32) {
    %c0_i32 = arith.constant 0 : i32
    %c0_i32_0 = arith.constant 0 : i32
    %c0_i32_1 = arith.constant 0 : i32
    %c0_i32_2 = arith.constant 0 : i32
    return %c0_i32, %c0_i32_0, %c0_i32_1 : i32, i32, i32
  }
  func.func @transform_3(%arg0: i32) -> (i32, i32) {
    %c0_i32 = arith.constant 0 : i32
    %c0_i32_0 = arith.constant 0 : i32
    %c0_i32_1 = arith.constant 0 : i32
    return %c0_i32, %c0_i32_0 : i32, i32
  }
  func.func @transform_4(%arg0: i32) -> (i32, i32, i32) {
    %c0_i32 = arith.constant 0 : i32
    %c0_i32_0 = arith.constant 0 : i32
    %c0_i32_1 = arith.constant 0 : i32
    return %arg0, %c0_i32, %c0_i32_0 : i32, i32, i32
  }
  func.func @transform_5(%arg0: i32) -> (i32, i32, i32) {
    %c0_i32 = arith.constant 0 : i32
    %c0_i32_0 = arith.constant 0 : i32
    %c0_i32_1 = arith.constant 0 : i32
    return %arg0, %c0_i32, %c0_i32_0 : i32, i32, i32
  }
}

</mosaic_0001>

<bundles_post_ra>
// kernel: block_forward.1
= control target key start
LH: loop header
LB: loop body
LE: loop exit
PB: predicated region body
PF: predicated region fallthrough
CT: control target
= control target key end

     0   :  { %s852_s18 = smov 0   ;;  %s919_s0 = inlined_call_operand.vmem [shape: f32[2,2,16,72], index: 0, kind: input, shape index: {}]   ;;  %s920_s1 = inlined_call_operand.vmem [shape: f32[2,2,4,3,72], index: 1, kind: input, shape index: {}]   ;;  %s921_s2 = inlined_call_operand.vmem [shape: f32[4,8,16], index: 2, kind: input, shape index: {}]   ;;  %s922_s3 = inlined_call_operand.vmem [shape: f32[8,1], index: 3, kind: input, shape index: {}]   ;;  %s923_s4 = inlined_call_operand.vmem [shape: f32[2,11,64], index: 4, kind: output, shape index: {0}]   ;;  %s924_s5 = inlined_call_operand.vmem [shape: f32[2,3,64], index: 5, kind: output, shape index: {1}]  }
   0x1 LB: > { %s724_s19 = sadd.s32 4294967295, %s816_s18   ;;  %p728_p0 = scmp.ge.s32.totalorder %s816_s18, 1  ;;  %s816_s18 = sphi %s852_s18, %s16_s18  }
   0x2   : > { %p200_p1 = scmp.lt.s32.totalorder %s816_s18, 3 }
   0x4   : > { %p201_p2 = pnand %p728_p0, %p200_p1 }
   0x5   : > { %p237_p3 = scmp.lt.s32.totalorder (!%p201_p2), %s724_s19, 1  ;;  %s821_s27 = smov (!%p201_p2), 120  }
   0x6   : > { %204 = sbr.rel (%p201_p2) target bundleno = 337 (0x151), region = 36 }
   0xb   : > { %v818_v0 = vmov 0.0   ;;  %s926_s19 = smov (!%p237_p3, %s724_s19), 1  ;;  %vm819_vm0 = vmmov 0   ;;  %v820_v1 = vmov 0   ;;  %v738_v5 = vld [vmem:[%s921_s2 + $0x8] sm:$0xff]  ;;  %vm264_vm1 = vcmask 130048  }
   0xc   : > { %769 = vmatprep.subr.mxu0 %v818_v0  ;;  %776 = vmatprep.subr.mxu1 %v818_v0  ;;  %s754_s20 = sshll.u32 %s926_s19, 5  ;;  %v258_v14 = vld [vmem:[%s921_s2] sm:$0xff]  ;;  %v741_v26 = vld [vmem:[%s921_s2 + $0x10] sm:$0xff]  ;;  %v743_v27 = vld [vmem:[%s921_s2 + $0x18] sm:$0xff]  ;;  %s756_s13 = sshll.u32 %s926_s19, 4  ;;  %vm623_vm2 = vcmask 518144  }
   0xd   : > { %773 = vmatprep.mubr.msk.f32.mxu0 %vm819_vm0, %v818_v0  ;;  %780 = vmatprep.mubr.msk.f32.mxu1 %vm819_vm0, %v818_v0  ;;  %s241_s23 = scalar_lea.vmem %s919_s0, %s754_s20  ;;  %s871_s26 = scalar_lea.vmem %s920_s1, %s754_s20  ;;  %v579_v18 = vld [vmem:[%s922_s3] sm:$0xff]  ;;  %vm621_vm3 = vcmask 523264  }
   0xe   : > { %809 = vset.pattern.permute.xlu0 %v820_v1  ;;  %v257_v2 = vld [vmem:[%s241_s23 + $0x8] sm:$0xff]  ;;  %v737_v3 = vld [vmem:[%s241_s23 + $0x18] sm:$0xff]  ;;  %v256_v4 = vld [vmem:[%s241_s23] sm:$0xff]  ;;  %s735_s14 = sshll.u32 %s926_s19, 2  ;;  %s251_s17 = scalar_lea.vmem %s923_s4, %s756_s13 }
   0xf   : > { %417 = vrot.lane.b32.xlu0 %v257_v2, %s821_s27  ;;  %501 = vrot.lane.b32.xlu1 %v737_v3, %s821_s27  ;;  %v587_v6 = vld [vmem:[%s871_s26] sm:$0x7]  ;;  %v736_v7 = vld [vmem:[%s241_s23 + $0x10] sm:$0xff]  ;;  %s255_s22 = scalar_lea.vmem %s924_s5, %s735_s14 }
  0x10   : > { %770 = vmatpush3.msra.mxu0 %v737_v3  ;;  %777 = vmatpush3.msra.mxu1 %v257_v2  ;;  %v745_v8 = vld [vmem:[%s871_s26 + $0x4] sm:$0x7]  ;;  %v746_v9 = vld [vmem:[%s871_s26 + $0x8] sm:$0x7]  ;;  %v748_v11 = vld [vmem:[%s871_s26 + $0x10] sm:$0x7] }
  0x11   : > { %771 = vmatprep.subr.mxu0 %v818_v0  ;;  %778 = vmatprep.subr.mxu1 %v818_v0  ;;  %v590_v10 = vadd.f32 %v745_v8, %v587_v6  ;;  %v749_v12 = vld [vmem:[%s871_s26 + $0x14] sm:$0x7]  ;;  %v750_v13 = vld [vmem:[%s871_s26 + $0x18] sm:$0x7]  ;;  %v747_v15 = vld [vmem:[%s871_s26 + $0xc] sm:$0x7] }
  0x12   : > { %772 = vmatpush3.msra.mxu0 %v736_v7  ;;  %779 = vmatpush3.msra.mxu1 %v256_v4  ;;  %v601_v16 = vadd.f32 %v749_v12, %v748_v11  ;;  %v751_v20 = vld [vmem:[%s871_s26 + $0x1c] sm:$0x7] }
  0x13   : > { %415 = vrot.lane.b32.xlu0 %v256_v4, %s821_s27  ;;  %499 = vrot.lane.b32.xlu1 %v736_v7, %s821_s27  ;;  %v593_v17 = vadd.f32 %v746_v9, %v590_v10 }
  0x14   : > { %783 = vmatprep.subr.mxu0 %v818_v0  ;;  %774 = vmatmul.mubr.msk.f32.vlgmr.msra.gmra.mxu0 %vm264_vm1, %v738_v5  ;;  %v604_v19 = vadd.f32 %v750_v13, %v601_v16 }
  0x15   : > { %790 = vmatprep.subr.mxu1 %v818_v0  ;;  %781 = vmatmul.mubr.msk.f32.vlgmr.msra.gmra.mxu1 %vm264_vm1, %v258_v14  ;;  %v596_v21 = vadd.f32 %v747_v15, %v593_v17 }
  0x16   : > { %787 = vmatprep.mubr.msk.f32.mxu0 %vm819_vm0, %v818_v0  ;;  %794 = vmatprep.mubr.msk.f32.mxu1 %vm819_vm0, %v818_v0  ;;  %v607_v22 = vadd.f32 %v751_v20, %v604_v19 }
  0x17   : > { %582 = vperm.xlu0 %809, %v579_v18   ;;  %611 = vrot.lane.b32.xlu1 %v596_v21, %s821_s27 }
  0x18   : > { %v609_v23 = vadd.f32 %v607_v22, %v596_v21 }
  0x1b   : > { %616 = vrot.lane.b32.xlu1 %v607_v22, %s821_s27 }
  0x81   : > { %v418_v24 = vpop.permute.xlu0 %417  ;;  %v502_v25 = vpop.permute.xlu1 %501 }
  0x82   : > { %784 = vmatpush3.msra.mxu0 %v418_v24  ;;  %791 = vmatpush3.msra.mxu1 %v502_v25 }
  0x83   : > { %785 = vmatprep.subr.mxu0 %v818_v0  ;;  %792 = vmatprep.subr.mxu1 %v818_v0 }
  0x85   : > { %v416_v28 = vpop.permute.xlu0 %415  ;;  %v500_v29 = vpop.permute.xlu1 %499 }
  0x86   : > { %786 = vmatpush3.msra.mxu0 %v416_v28  ;;  %793 = vmatpush3.msra.mxu1 %v500_v29 }
  0x87   : > { %788 = vmatmul.mubr.msk.f32.vlgmr.msra.gmra.mxu0 %vm264_vm1, %v741_v26  ;;  %795 = vmatmul.mubr.msk.f32.vlgmr.msra.gmra.mxu1 %vm264_vm1, %v743_v27 }
  0x89   : > { %v612_v30 = vpop.permute.xlu1 %611 }
  0x8a   : > { %v614_v31 = vadd.f32 %v612_v30, %v609_v23 }
  0x8d   : > { %v617_v32 = vpop.permute.xlu1 %616 }
  0x8e   : > { %v619_v33 = vadd.f32 %v617_v32, %v614_v31 }
  0x90   : > { %v620_v34 = vmul.f32 0.0625, %v619_v33 }
  0x92   : > { %624 = vst.msk [vmem:[%s251_s17 + $0x8] sm:$0x7] %vm623_vm2, %v620_v34  ;;  %625 = vst.msk [vmem:[%s255_s22] sm:$0x7] %vm623_vm2, %v620_v34  ;;  %v583_v43 = vpop.permute.xlu0 %582 }
  0xd4   : > { %v334_v35 = vpop.f32.mrf.mxu0 }
  0xd5   : > { %v407_v36 = vpop.f32.mrf.mxu1 }
  0xd6   : > { %v775_v37 = vpop.f32.mrf.mxu0  ;;  %v408_v38 = vadd.f32 %v407_v36, %v334_v35 }
  0xd7   : > { %v782_v39 = vpop.f32.mrf.mxu1 }
 0x147   : > { %v490_v40 = vpop.f32.mrf.mxu0  ;;  %v574_v41 = vpop.f32.mrf.mxu1 }
 0x148   : > { %v494_v42 = vadd.f32 %v490_v40, %v408_v38 }
 0x149   : > { %v789_v44 = vpop.f32.mrf.mxu0  ;;  %v796_v45 = vpop.f32.mrf.mxu1 }
 0x14a   : > { %v578_v46 = vadd.f32 %v574_v41, %v494_v42 }
 0x14c   : > { %v585_v47 = vadd.f32 %v583_v43, %v578_v46 }
 0x14e   : > { %v586_v48 = vmax.f32 %v585_v47, 0.0 }
 0x150   : > { %622 = vst.msk [vmem:[%s251_s17] sm:$0xff] %vm621_vm3, %v586_v48 }
 0x151 PF: > { %s16_s18 = sadd.s32 1, %s816_s18  }
 0x152   : > { %p13_p4 = scmp.ge.s32.totalorder %s16_s18, 4  }
 0x154   :  { %15 = sbr.rel (!%p13_p4) target bundleno = 1 (0x1), region = 92 }

</bundles_post_ra>
